<compile_context>
chip_gen: v5e
topology: v5e:2x2
jax: 0.10.0
libtpu: 0.0.40
codegen_flags: <defaults>
</compile_context>

<pallas_src>
import functools

import jax
import jax.numpy as jnp
from jax.experimental import pallas as pl
from jax.experimental.pallas import tpu as pltpu

HIDDEN = 64      # fc1/fc2 width (from the PyTorch spec)
N_S_PAD = 128    # N_S=111 zero-padded up to a full 128-lane tile
HEAD_PAD = 128   # fused (mu | sigma) head zero-padded up to 128 lanes


def actor_kernel(s_ref, w1_ref, w2_ref, b2_ref, wh_ref, bh_ref,
                 out_ref, *, n_a):
    # fc1 -> tanh.  s is zero-padded on K with a constant-1 lane at n_s and
    # b1 folded into w1's row n_s, so the bias comes out of the MXU for free.
    x = jnp.tanh(
        jnp.dot(s_ref[...], w1_ref[...], preferred_element_type=jnp.float32)
    )
    # fc2 -> tanh
    x = jnp.tanh(
        jnp.dot(x, w2_ref[...], preferred_element_type=jnp.float32)
        + b2_ref[...]
    )
    # Fused mu|sigma head: one matmul into a lane-dense (TB, 128) tile.
    h = (jnp.dot(x, wh_ref[...], preferred_element_type=jnp.float32)
         + bh_ref[...])
    # lanes [0, n_a)      -> mu (identity)
    # lanes [n_a, 2*n_a)  -> sigma = exp(log_sigma)   (EUP, free slot)
    # lanes [2*n_a, 128)  -> zero padding: exp(0)=1, discarded by the wrapper
    lane = jax.lax.broadcasted_iota(jnp.int32, h.shape, dimension=1)
    out_ref[...] = jnp.where(lane >= n_a, jnp.exp(h), h)


def actor_forward(s, packed, n_a, *, tb=128):
    """s: (B, N_S) float32.  Returns (mu, sigma), each (B, n_a)."""
    B, n_s = s.shape
    assert n_s < N_S_PAD, "need one spare lane for the folded fc1 bias"
    nb = pl.cdiv(B, tb)
    b_pad = nb * tb

    # Zero-pad batch to a multiple of the batch tile and features to 128
    # lanes.  Lane n_s is the constant-1 "bias lane" (only for real rows;
    # padded batch rows stay all-zero and are sliced away below).
    s_p = jnp.zeros((b_pad, N_S_PAD), jnp.float32)
    s_p = s_p.at[:B, :n_s].set(s)
    s_p = s_p.at[:B, n_s].set(1.0)

    kernel = functools.partial(actor_kernel, n_a=n_a)
    out = pl.pallas_call(
        kernel,
        out_shape=jax.ShapeDtypeStruct((b_pad, HEAD_PAD), jnp.float32),
        grid=(nb,),
        in_specs=[
            pl.BlockSpec((tb, N_S_PAD), lambda i: (i, 0)),        # s tile
            pl.BlockSpec((N_S_PAD, HIDDEN), lambda i: (0, 0)),    # w1|b1 (resident)
            pl.BlockSpec((HIDDEN, HIDDEN), lambda i: (0, 0)),     # w2
            pl.BlockSpec((1, HIDDEN), lambda i: (0, 0)),          # b2
            pl.BlockSpec((HIDDEN, HEAD_PAD), lambda i: (0, 0)),   # fused head W
            pl.BlockSpec((1, HEAD_PAD), lambda i: (0, 0)),        # fused head b
        ],
        out_specs=pl.BlockSpec((tb, HEAD_PAD), lambda i: (i, 0)),
        compiler_params=pltpu.CompilerParams(
            dimension_semantics=("parallel",)),
    )(s_p, packed["w1"], packed["w2"], packed["b2"],
      packed["whead"], packed["bhead"])

    mu = out[:B, :n_a]
    sigma = out[:B, n_a:2 * n_a]
    return mu, sigma


def init_actor_params(key, n_s, n_a, hidden=HIDDEN):
    """Deterministic init mirroring nn.Linear defaults (+ mu scaling)."""
    def linear(key, fan_in, fan_out):
        kw, kb = jax.random.split(key)
        bound = 1.0 / jnp.sqrt(fan_in)
        # PyTorch stores (out, in); we keep (in, out) so the kernel does x @ W.
        w = jax.random.uniform(kw, (fan_in, fan_out), jnp.float32, -bound, bound)
        b = jax.random.uniform(kb, (1, fan_out), jnp.float32, -bound, bound)
        return w, b

    k1, k2, k3, k4 = jax.random.split(key, 4)
    w1, b1 = linear(k1, n_s, hidden)
    w2, b2 = linear(k2, hidden, hidden)
    wsig, bsig = linear(k3, hidden, n_a)
    wmu, bmu = linear(k4, hidden, n_a)
    # self.mu.weight.data.mul_(0.1); self.mu.bias.data.mul_(0.0)
    wmu = wmu * 0.1
    bmu = bmu * 0.0
    return dict(w1=w1, b1=b1, w2=w2, b2=b2,
                wmu=wmu, bmu=bmu, wsig=wsig, bsig=bsig)


def pack_actor_params(p):
    """One-time packing:
       * pad N_S->128 and fold b1 into w1's spare row n_s (bias lane),
       * fuse mu|sigma heads into one (hidden, 128) matrix (zero padded)."""
    n_s, hidden = p["w1"].shape
    n_a = p["wmu"].shape[1]

    w1p = jnp.zeros((N_S_PAD, hidden), jnp.float32)
    w1p = w1p.at[:n_s, :].set(p["w1"])
    w1p = w1p.at[n_s, :].set(p["b1"][0])      # folded fc1 bias

    whead = jnp.zeros((hidden, HEAD_PAD), jnp.float32)
    whead = whead.at[:, :n_a].set(p["wmu"]).at[:, n_a:2 * n_a].set(p["wsig"])
    bhead = jnp.zeros((1, HEAD_PAD), jnp.float32)
    bhead = bhead.at[:, :n_a].set(p["bmu"]).at[:, n_a:2 * n_a].set(p["bsig"])

    return dict(w1=w1p, w2=p["w2"], b2=p["b2"], whead=whead, bhead=bhead)


def actor_forward_ref(s, p):
    x = jnp.tanh(s @ p["w1"] + p["b1"])
    x = jnp.tanh(x @ p["w2"] + p["b2"])
    mu = x @ p["wmu"] + p["bmu"]
    sigma = jnp.exp(x @ p["wsig"] + p["bsig"])
    return mu, sigma


if __name__ == "__main__":
    # Ant-v2: N_S = 111 observations, N_A = 8 actions.
    # B = 256 environments/timesteps batched so the grid (2 batch tiles of 128)
    # and the VMEM-resident weight BlockSpecs are actually exercised.
    N_S, N_A, B = 111, 8, 256

    key = jax.random.PRNGKey(0)
    k_params, k_obs = jax.random.split(key)
    params = init_actor_params(k_params, N_S, N_A)
    packed = pack_actor_params(params)
    s = jax.random.normal(k_obs, (B, N_S), dtype=jnp.float32)

    mu, sigma = actor_forward(s, packed, N_A)
    jax.block_until_ready((mu, sigma))

    mu_ref, sigma_ref = actor_forward_ref(s, params)
    assert mu.shape == (B, N_A) and sigma.shape == (B, N_A)
    assert jnp.allclose(mu, mu_ref, atol=1e-5, rtol=1e-5)
    assert jnp.allclose(sigma, sigma_ref, atol=1e-5, rtol=1e-5)
    assert bool(jnp.all(sigma > 0))

    # TODO(synk): choose_action's Normal(mu, sigma).sample() (RNG policy
    # sampling) is intentionally left to the host/JAX side, not the kernel.
    print("KERNEL_OK")
</pallas_src>

<mosaic_0001>
module attributes {stable_mosaic.version = 11 : i64} {
  func.func @actor_kernel(%arg0: i32, %arg1: memref<128x128xf32, #tpu.memory_space<vmem>>, %arg2: memref<128x64xf32, #tpu.memory_space<vmem>>, %arg3: memref<64x64xf32, #tpu.memory_space<vmem>>, %arg4: memref<1x64xf32, #tpu.memory_space<vmem>>, %arg5: memref<64x128xf32, #tpu.memory_space<vmem>>, %arg6: memref<1x128xf32, #tpu.memory_space<vmem>>, %arg7: memref<128x128xf32, #tpu.memory_space<vmem>>) attributes {dimension_semantics = [#tpu.dimension_semantics<parallel>], iteration_bounds = array<i64: 2>, scalar_prefetch = 0 : i64, scratch_operands = 0 : i64, tpu.core_type = #tpu.core_type<tc>, window_params = [{transform_indices = @transform_0, window_bounds = array<i64: 128, 128>}, {pipeline_mode = #tpu.pipeline_mode<synchronous>, transform_indices = @transform_1, window_bounds = array<i64: 128, 64>}, {pipeline_mode = #tpu.pipeline_mode<synchronous>, transform_indices = @transform_2, window_bounds = array<i64: 64, 64>}, {pipeline_mode = #tpu.pipeline_mode<synchronous>, transform_indices = @transform_3, window_bounds = array<i64: 1, 64>}, {pipeline_mode = #tpu.pipeline_mode<synchronous>, transform_indices = @transform_4, window_bounds = array<i64: 64, 128>}, {pipeline_mode = #tpu.pipeline_mode<synchronous>, transform_indices = @transform_5, window_bounds = array<i64: 1, 128>}, {transform_indices = @transform_6, window_bounds = array<i64: 128, 128>}]} {
    %c0 = arith.constant 0 : index
    %c0_0 = arith.constant 0 : index
    %0 = vector.load %arg1[%c0, %c0_0] : memref<128x128xf32, #tpu.memory_space<vmem>>, vector<128x128xf32>
    %c0_1 = arith.constant 0 : index
    %c0_2 = arith.constant 0 : index
    %1 = vector.load %arg2[%c0_1, %c0_2] : memref<128x64xf32, #tpu.memory_space<vmem>>, vector<128x64xf32>
    %cst = arith.constant dense<0.000000e+00> : vector<128x64xf32>
    %2 = tpu.matmul %0, %1, %cst {dimension_numbers = #tpu.dot_dimension_numbers<[1], [0], [0], [1], [0, 0, 1, 1], [], []>} : vector<128x128xf32>, vector<128x64xf32>, vector<128x64xf32> -> vector<128x64xf32>
    %3 = math.tanh %2 : vector<128x64xf32>
    %c0_3 = arith.constant 0 : index
    %c0_4 = arith.constant 0 : index
    %4 = vector.load %arg3[%c0_3, %c0_4] : memref<64x64xf32, #tpu.memory_space<vmem>>, vector<64x64xf32>
    %cst_5 = arith.constant dense<0.000000e+00> : vector<128x64xf32>
    %5 = tpu.matmul %3, %4, %cst_5 {dimension_numbers = #tpu.dot_dimension_numbers<[1], [0], [0], [1], [0, 0, 1, 1], [], []>} : vector<128x64xf32>, vector<64x64xf32>, vector<128x64xf32> -> vector<128x64xf32>
    %c0_6 = arith.constant 0 : index
    %c0_7 = arith.constant 0 : index
    %6 = vector.load %arg4[%c0_6, %c0_7] : memref<1x64xf32, #tpu.memory_space<vmem>>, vector<1x64xf32>
    %7 = vector.broadcast %6 : vector<1x64xf32> to vector<128x64xf32>
    %8 = arith.addf %5, %7 : vector<128x64xf32>
    %9 = math.tanh %8 : vector<128x64xf32>
    %c0_8 = arith.constant 0 : index
    %c0_9 = arith.constant 0 : index
    %10 = vector.load %arg5[%c0_8, %c0_9] : memref<64x128xf32, #tpu.memory_space<vmem>>, vector<64x128xf32>
    %cst_10 = arith.constant dense<0.000000e+00> : vector<128x128xf32>
    %11 = tpu.matmul %9, %10, %cst_10 {dimension_numbers = #tpu.dot_dimension_numbers<[1], [0], [0], [1], [0, 0, 1, 1], [], []>} : vector<128x64xf32>, vector<64x128xf32>, vector<128x128xf32> -> vector<128x128xf32>
    %c0_11 = arith.constant 0 : index
    %c0_12 = arith.constant 0 : index
    %12 = vector.load %arg6[%c0_11, %c0_12] : memref<1x128xf32, #tpu.memory_space<vmem>>, vector<1x128xf32>
    %13 = vector.broadcast %12 : vector<1x128xf32> to vector<128x128xf32>
    %14 = arith.addf %11, %13 : vector<128x128xf32>
    %15 = tpu.iota {dimensions = array<i32: 1>} : vector<128x128xi32>
    %c8_i32 = arith.constant 8 : i32
    %16 = vector.broadcast %c8_i32 : i32 to vector<128x128xi32>
    %17 = arith.cmpi sge, %15, %16 : vector<128x128xi32>
    %18 = math.exp %14 : vector<128x128xf32>
    %19 = arith.select %17, %18, %14 : vector<128x128xi1>, vector<128x128xf32>
    %c0_13 = arith.constant 0 : index
    %c0_14 = arith.constant 0 : index
    %20 = vector.load %arg7[%c0_13, %c0_14] : memref<128x128xf32, #tpu.memory_space<vmem>>, vector<128x128xf32>
    tpu.vector_store %arg7[%c0_13, %c0_14], %19 {strides = array<i32>} : memref<128x128xf32, #tpu.memory_space<vmem>>, vector<128x128xf32>,
    return
  }
  func.func @transform_0(%arg0: i32) -> (i32, i32) {
    %c0_i32 = arith.constant 0 : i32
    %c0_i32_0 = arith.constant 0 : i32
    return %arg0, %c0_i32 : i32, i32
  }
  func.func @transform_1(%arg0: i32) -> (i32, i32) {
    %c0_i32 = arith.constant 0 : i32
    %c0_i32_0 = arith.constant 0 : i32
    %c0_i32_1 = arith.constant 0 : i32
    return %c0_i32, %c0_i32_0 : i32, i32
  }
  func.func @transform_2(%arg0: i32) -> (i32, i32) {
    %c0_i32 = arith.constant 0 : i32
    %c0_i32_0 = arith.constant 0 : i32
    %c0_i32_1 = arith.constant 0 : i32
    return %c0_i32, %c0_i32_0 : i32, i32
  }
  func.func @transform_3(%arg0: i32) -> (i32, i32) {
    %c0_i32 = arith.constant 0 : i32
    %c0_i32_0 = arith.constant 0 : i32
    %c0_i32_1 = arith.constant 0 : i32
    return %c0_i32, %c0_i32_0 : i32, i32
  }
  func.func @transform_4(%arg0: i32) -> (i32, i32) {
    %c0_i32 = arith.constant 0 : i32
    %c0_i32_0 = arith.constant 0 : i32
    %c0_i32_1 = arith.constant 0 : i32
    return %c0_i32, %c0_i32_0 : i32, i32
  }
  func.func @transform_5(%arg0: i32) -> (i32, i32) {
    %c0_i32 = arith.constant 0 : i32
    %c0_i32_0 = arith.constant 0 : i32
    %c0_i32_1 = arith.constant 0 : i32
    return %c0_i32, %c0_i32_0 : i32, i32
  }
  func.func @transform_6(%arg0: i32) -> (i32, i32) {
    %c0_i32 = arith.constant 0 : i32
    %c0_i32_0 = arith.constant 0 : i32
    return %arg0, %c0_i32 : i32, i32
  }
}

</mosaic_0001>

<bundles_post_ra>
// kernel: tpu_custom_call.1
= control target key start
LH: loop header
LB: loop body
LE: loop exit
PB: predicated region body
PF: predicated region fallthrough
CT: control target
= control target key end

     0   :  { %11 = vsyncpa [#allocation3], 0  ;;  %s1548_s0 = inlined_call_operand.hbm [shape: f32[256,128], index: 0, kind: input, shape index: {}]   ;;  %s1549_s1 = inlined_call_operand.vmem [shape: f32[128,64], index: 1, kind: input, shape index: {}]   ;;  %s1550_s2 = inlined_call_operand.vmem [shape: f32[64,64], index: 2, kind: input, shape index: {}]   ;;  %s1551_s3 = inlined_call_operand.vmem [shape: f32[1,64], index: 3, kind: input, shape index: {}]   ;;  %s1552_s4 = inlined_call_operand.vmem [shape: f32[64,128], index: 4, kind: input, shape index: {}]   ;;  %s1553_s5 = inlined_call_operand.vmem [shape: f32[1,128], index: 5, kind: input, shape index: {}]   ;;  %s1554_s6 = inlined_call_operand.hbm [shape: f32[256,128], index: 6, kind: output, shape index: {}]  }
   0x1   :  { %13 = vsyncpa [#allocation3 + $0x1], 0 }
   0x2   :  { %14 = vsyncpa [#allocation4], 0 }
   0x3   :  { %16 = vsyncpa [#allocation4 + $0x1], 0  ;;  %s1175_s21 = smov 0   ;;  %s1177_s22 = smov 0  }
   0x4   :  { %s1179_s23 = smov 0   ;;  %s1181_s24 = smov 0  }
   0x5 LB: > { %s1196_s25 = sadd.s32 4294967295, %s1134_s24   ;;  %s810_s26 = sadd.s32 4294967294, %s1134_s24   ;;  %s1134_s24 = sphi %s1181_s24, %s1564_s24   ;;  %s1130_s23 = sphi %s1179_s23, %s1563_s23   ;;  %s1126_s22 = sphi %s1177_s22, %s1562_s22   ;;  %s1122_s21 = sphi %s1175_s21, %s1561_s21  }
   0x6   : > { %s1200_s27 = sadd.s32 1, %s1134_s24   ;;  %s29_s28 = sadd.s32 1, %s1130_s23 }
   0x7   : > { %s26_s29 = ssub.s32 %s1134_s24, %s1200_s27  ;;  %p36_p0 = scmp.ne.s32.totalorder %s1130_s23, %s1126_s22 }
   0x8   : > { %p27_p1 = scmp.eq.s32.totalorder %s26_s29, 0  ;;  %p37_p2 = scmp.eq.s32.totalorder %s1134_s24, 0 }
   0x9   : > { %p42_p3 = scmp.ne.s32.totalorder %s1126_s22, %s1122_s21  ;;  %p43_p4 = scmp.eq.s32.totalorder %s1196_s25, 0 }
   0xa   : > { %s1212_s30 = scalar_select %p27_p1, %s1130_s23, %s29_s28  }
   0xb   : > { %p1214_p5 = por %p37_p2, %p36_p0  ;;  %p1218_p6 = por %p43_p4, %p42_p3 }
   0xc   : > { %p171_p7 = scmp.eq.s32.totalorder %s1196_s25, 1  ;;  %p177_p8 = scmp.eq.s32.totalorder %s810_s26, 1 }
   0xd   : > { %p902_p10 = scmp.lt.s32.totalorder %s1134_s24, 2  ;;  %s212_s11 = sand.u32 1, %s1130_s23  }
   0xe   : > { %p1225_p11 = por %p171_p7, %p36_p0  ;;  %p1229_p12 = por %p177_p8, %p42_p3 }
   0xf   : > { %s856_s12 = sshll.u32 %s1134_s24, 7  ;;  %s813_s13 = sshll.u32 %s212_s11, 7 }
  0x10   : > { %s221_s16 = scalar_lea.hbm %s1548_s0, %s856_s12  ;;  %s216_s18 = scalar_lea.vmem [#allocation2], %s813_s13 }
  0x11   : > { %s222_s17 = sshll.u32 %s221_s16, 4  ;;  %s224_s19 = sshll.u32 %s216_s18, 4  ;;  %s223_s17 = int_to_ptr.hbm [resolvable:$true] %s222_s17  ;;  %s225_s19 = int_to_ptr.vmem [resolvable:$true] %s224_s19 }
  0x12   : > { %p1240_p13 = pnand %p902_p10, %p1214_p5  ;;  %p816_p0 = scmp.ge.s32.totalorder %s1134_s24, 1 }
  0x13   : > { %p232_p1 = scmp.lt.s32.totalorder %s1134_s24, 3  ;;  %s213_s26 = scalar_lea.sflag [#allocation3], %s212_s11 }
  0x14   : > { %s1038_s28 = sshra.s32 %s223_s17, 4  ;;  %p1042_p3 = pneg %p1240_p13  ;;  %s1039_s28 = int_to_ptr.hbm [resolvable:$true] %s1038_s28 }
  0x15   : > { %s1040_s29 = scalar_lea.hbm %s1039_s28, 128  ;;  %s1045_s7 = scalar_lea.hbm %s1548_s0, 256 }
  0x16   : > { %p1041_p2 = scmp.ne.s32.totalorder %s1039_s28, %s1040_s29  ;;  %p1046_p5 = scmp.lt.s32.totalorder %s1039_s28, %s1548_s0 }
  0x17   : > { %p1047_p8 = scmp.lt.s32.totalorder %s1045_s7, %s1040_s29 }
  0x18   : > { %p1043_p4 = pnand %p1042_p3, %p1041_p2 }
  0x19   : > { %p1048_p10 = por %p1047_p8, %p1046_p5 }
  0x1a   : > { %p1044_p7 = pneg %p1043_p4 }
  0x1c   : > { %p1049_p9 = pnand %p1048_p10, %p1044_p7 }
  0x1e   : > { %1052 = shalt.err (!%p1049_p9)
}
  0x1f   : > { %s1136_s11 = smov 128   ;;  %s1137_s16 = smov 8  }
  0x20   : > { %897 = dma.hbm_to_vmem [thread:$0]  (!%p1240_p13), %s223_s17, 2048, %s225_s19, %s213_s26, %s1136_s11, %s1136_s11, %s1137_s16  }
  0x21   : > { %p233_p2 = pnand %p816_p0, %p232_p1 }
  0x22   : > { %s1261_s18 = sand.u32 (!%p233_p2), 1, %s1126_s22  }
  0x23   : > { %236 = sbr.rel (%p233_p2) target bundleno = 585 (0x249), region = 44  ;;  %s817_s28 = sshll.u32 (!%p233_p2), %s1261_s18, 7 }
  0x24   : > { %s239_s29 = scalar_lea.sflag (!%p233_p2), [#allocation3], %s1261_s18  ;;  %s1267_s12 = scalar_lea.vmem (!%p233_p2), [#allocation2], %s817_s28 }
  0x28   : > { %1113 = dma.done.wait (%p1218_p6), %s239_s29, 2048  }
  0x29   : > { %1115 = vsyncadd (%p1218_p6), %s239_s29, 4294965248  ;;  %v305_v0 = vld [vmem:[%s1549_s1 + $0x78] sm:$0xff]  ;;  %v304_v1 = vld [vmem:[%s1549_s1 + $0x70] sm:$0xff]  ;;  %vm399_vm0 = vcmask 523264   ;;  %s1452_s14 = scalar_lea.vmem [#allocation5], %s817_s28  ;;  %s857_s28 = sshll.u32 %s1196_s25, 7 }
  0x2a   : > { %306 = vmatpush.msra.mxu0 %v305_v0  ;;  %858 = vmatpush.msra.mxu3 %v305_v0  ;;  %v303_v2 = vld [vmem:[%s1549_s1 + $0x68] sm:$0xff]  ;;  %v302_v3 = vld [vmem:[%s1549_s1 + $0x60] sm:$0xff]  ;;  %v301_v4 = vld [vmem:[%s1549_s1 + $0x58] sm:$0xff]  ;;  %s733_s11 = scalar_lea.hbm %s1554_s6, %s857_s28  ;;  %s734_s16 = sshll.u32 %s1452_s14, 4  ;;  %s735_s16 = int_to_ptr.vmem [resolvable:$true] %s734_s16 }
  0x2b   : > { %v300_v5 = vld [vmem:[%s1549_s1 + $0x50] sm:$0xff]  ;;  %v299_v6 = vld [vmem:[%s1549_s1 + $0x48] sm:$0xff]  ;;  %v298_v7 = vld [vmem:[%s1549_s1 + $0x40] sm:$0xff]  ;;  %s736_s29 = sshll.u32 %s733_s11, 4  ;;  %s722_s25 = scalar_lea.sflag [#allocation4], %s1261_s18  ;;  %s737_s29 = int_to_ptr.hbm [resolvable:$true] %s736_s29 }
  0x2c   : > { %307 = vmatpush.msra.mxu0 %v304_v1  ;;  %859 = vmatpush.msra.mxu3 %v304_v1  ;;  %v297_v8 = vld [vmem:[%s1549_s1 + $0x38] sm:$0xff]  ;;  %v296_v9 = vld [vmem:[%s1549_s1 + $0x30] sm:$0xff]  ;;  %v295_v10 = vld [vmem:[%s1549_s1 + $0x28] sm:$0xff]  ;;  %s1088_s26 = scalar_lea.hbm %s1554_s6, 256 }
  0x2d   : > { %v294_v11 = vld [vmem:[%s1549_s1 + $0x20] sm:$0xff]  ;;  %v293_v12 = vld [vmem:[%s1549_s1 + $0x18] sm:$0xff]  ;;  %v292_v13 = vld [vmem:[%s1549_s1 + $0x10] sm:$0xff] }
  0x2e   : > { %308 = vmatpush.msra.mxu0 %v303_v2  ;;  %860 = vmatpush.msra.mxu3 %v303_v2  ;;  %v291_v14 = vld [vmem:[%s1549_s1 + $0x8] sm:$0xff]  ;;  %v290_v15 = vld [vmem:[%s1549_s1] sm:$0xff]  ;;  %v285_v18 = vld [vmem:[%s1267_s12 + $0x58] sm:$0xff] }
  0x2f   : > { %v274_v16 = vld [vmem:[%s1267_s12] sm:$0xff]  ;;  %v275_v17 = vld [vmem:[%s1267_s12 + $0x8] sm:$0xff]  ;;  %v276_v19 = vld [vmem:[%s1267_s12 + $0x10] sm:$0xff] }
  0x30   : > { %309 = vmatpush.msra.mxu0 %v302_v3  ;;  %861 = vmatpush.msra.mxu3 %v302_v3  ;;  %v286_v20 = vld [vmem:[%s1267_s12 + $0x60] sm:$0xff]  ;;  %v277_v21 = vld [vmem:[%s1267_s12 + $0x18] sm:$0xff]  ;;  %v287_v22 = vld [vmem:[%s1267_s12 + $0x68] sm:$0xff] }
  0x31   : > { %v278_v23 = vld [vmem:[%s1267_s12 + $0x20] sm:$0xff]  ;;  %v288_v24 = vld [vmem:[%s1267_s12 + $0x70] sm:$0xff]  ;;  %v279_v25 = vld [vmem:[%s1267_s12 + $0x28] sm:$0xff] }
  0x32   : > { %310 = vmatpush.msra.mxu0 %v301_v4  ;;  %862 = vmatpush.msra.mxu3 %v301_v4  ;;  %v289_v26 = vld [vmem:[%s1267_s12 + $0x78] sm:$0xff]  ;;  %v280_v27 = vld [vmem:[%s1267_s12 + $0x30] sm:$0xff]  ;;  %v392_v30 = vld [vmem:[%s1550_s2 + $0x28] sm:$0xff] }
  0x33   : > { %v394_v28 = vld [vmem:[%s1550_s2 + $0x38] sm:$0xff]  ;;  %v393_v29 = vld [vmem:[%s1550_s2 + $0x30] sm:$0xff]  ;;  %v391_v31 = vld [vmem:[%s1550_s2 + $0x20] sm:$0xff] }
  0x34   : > { %311 = vmatpush.msra.mxu0 %v300_v5  ;;  %863 = vmatpush.msra.mxu3 %v300_v5  ;;  %v281_v32 = vld [vmem:[%s1267_s12 + $0x38] sm:$0xff]  ;;  %v282_v33 = vld [vmem:[%s1267_s12 + $0x40] sm:$0xff]  ;;  %v283_v34 = vld [vmem:[%s1267_s12 + $0x48] sm:$0xff] }
  0x35   : > { %456 = vmatpush.msra.mxu1 %v394_v28  ;;  %v284_v35 = vld [vmem:[%s1267_s12 + $0x50] sm:$0xff]  ;;  %v390_v36 = vld [vmem:[%s1550_s2 + $0x18] sm:$0xff]  ;;  %v388_v38 = vld [vmem:[%s1550_s2 + $0x8] sm:$0xff]  ;;  %s1082_s12 = sshra.s32 %s737_s29, 4  ;;  %s1083_s12 = int_to_ptr.hbm [resolvable:$true] %s1082_s12 }
  0x36   : > { %312 = vmatpush.msra.mxu0 %v299_v6  ;;  %864 = vmatpush.msra.mxu3 %v299_v6  ;;  %v389_v37 = vld [vmem:[%s1550_s2 + $0x10] sm:$0xff]  ;;  %v387_v39 = vld [vmem:[%s1550_s2] sm:$0xff]  ;;  %v536_v3 = vld [vmem:[%s1552_s4 + $0x38] sm:$0xff]  ;;  %s1084_s17 = scalar_lea.hbm %s1083_s12, 128  ;;  %p1089_p0 = scmp.lt.s32.totalorder %s1083_s12, %s1554_s6 }
  0x37   : > { %457 = vmatpush.msra.mxu1 %v393_v29  ;;  %v535_v4 = vld [vmem:[%s1552_s4 + $0x30] sm:$0xff]  ;;  %597 = vmatpush.msra.mxu2 %v536_v3  ;;  %v534_v5 = vld [vmem:[%s1552_s4 + $0x28] sm:$0xff]  ;;  %p1085_p6 = scmp.ne.s32.totalorder %s1083_s12, %s1084_s17  ;;  %p1090_p1 = scmp.lt.s32.totalorder %s1088_s26, %s1084_s17 }
  0x38   : > { %313 = vmatpush.msra.mxu0 %v298_v7  ;;  %865 = vmatpush.msra.mxu3 %v298_v7 }
  0x39   : > { %458 = vmatpush.msra.mxu1 %v392_v30  ;;  %598 = vmatpush.msra.mxu2 %v535_v4  ;;  %p1086_p9 = pnand %p1085_p6, %p1225_p11  ;;  %p1091_p3 = por %p1090_p1, %p1089_p0 }
  0x3a   : > { %314 = vmatpush.msra.mxu0 %v297_v8  ;;  %866 = vmatpush.msra.mxu3 %v297_v8 }
  0x3b   : > { %459 = vmatpush.msra.mxu1 %v391_v31  ;;  %599 = vmatpush.msra.mxu2 %v534_v5  ;;  %p1087_p13 = pneg %p1086_p9 }
  0x3c   : > { %315 = vmatpush.msra.mxu0 %v296_v9  ;;  %867 = vmatpush.msra.mxu3 %v296_v9 }
  0x3d   : > { %460 = vmatpush.msra.mxu1 %v390_v36  ;;  %p1092_p4 = pnand %p1091_p3, %p1087_p13 }
  0x3e   : > { %316 = vmatpush.msra.mxu0 %v295_v10  ;;  %868 = vmatpush.msra.mxu3 %v295_v10  ;;  %v533_v10 = vld [vmem:[%s1552_s4 + $0x20] sm:$0xff] }
  0x3f   : > { %461 = vmatpush.msra.mxu1 %v389_v37  ;;  %600 = vmatpush.msra.mxu2 %v533_v10 }
  0x40   : > { %317 = vmatpush.msra.mxu0 %v294_v11  ;;  %869 = vmatpush.msra.mxu3 %v294_v11 }
  0x41   : > { %462 = vmatpush.msra.mxu1 %v388_v38 }
  0x42   : > { %318 = vmatpush.msra.mxu0 %v293_v12  ;;  %870 = vmatpush.msra.mxu3 %v293_v12  ;;  %v532_v12 = vld [vmem:[%s1552_s4 + $0x18] sm:$0xff] }
  0x43   : > { %463 = vmatpush.msra.mxu1 %v387_v39  ;;  %601 = vmatpush.msra.mxu2 %v532_v12 }
  0x44   : > { %319 = vmatpush.msra.mxu0 %v292_v13  ;;  %871 = vmatpush.msra.mxu3 %v292_v13  ;;  %v531_v13 = vld [vmem:[%s1552_s4 + $0x10] sm:$0xff] }
  0x45   : > { %602 = vmatpush.msra.mxu2 %v531_v13 }
  0x46   : > { %320 = vmatpush.msra.mxu0 %v291_v14  ;;  %872 = vmatpush.msra.mxu3 %v291_v14  ;;  %v530_v14 = vld [vmem:[%s1552_s4 + $0x8] sm:$0xff] }
  0x47   : > { %603 = vmatpush.msra.mxu2 %v530_v14 }
  0x48   : > { %321 = vmatpush.msra.mxu0 %v290_v15  ;;  %873 = vmatpush.msra.mxu3 %v290_v15  ;;  %v529_v15 = vld [vmem:[%s1552_s4] sm:$0xff] }
  0x49   : > { %322 = vmatmul.f32.vlgmr.msra.gmra.mxu0 %v274_v16  ;;  %355 = vmatmul.f32.vlgmr.msra.gmra.mxu3 %v285_v18  ;;  %v1404_v16 = vld [vmem:[%s1551_s3] ss:$0 sm:$0xff] }
  0x4a   : > { %874 = vmatpush.msrb.mxu3 %v394_v28  ;;  %604 = vmatpush.msra.mxu2 %v529_v15 }
  0x4c   : > { %875 = vmatpush.msrb.mxu3 %v393_v29 }
  0x4e   : > { %876 = vmatpush.msrb.mxu3 %v392_v30 }
  0x50   : > { %877 = vmatpush.msrb.mxu3 %v391_v31 }
  0x51   : > { %325 = vmatmul.f32.gmra.mxu0 %v275_v17  ;;  %358 = vmatmul.f32.gmra.mxu3 %v286_v20 }
  0x52   : > { %878 = vmatpush.msrb.mxu3 %v390_v36 }
  0x54   : > { %879 = vmatpush.msrb.mxu3 %v389_v37 }
  0x56   : > { %880 = vmatpush.msrb.mxu3 %v388_v38 }
  0x58   : > { %881 = vmatpush.msrb.mxu3 %v387_v39 }
  0x59   : > { %328 = vmatmul.f32.gmra.mxu0 %v276_v19  ;;  %361 = vmatmul.f32.gmra.mxu3 %v287_v22 }
  0x5a   : > { %882 = vmatpush.msra.mxu3 %v536_v3 }
  0x5c   : > { %883 = vmatpush.msra.mxu3 %v535_v4  ;;  %v654_v4 = vlaneseq }
  0x5e   : > { %884 = vmatpush.msra.mxu3 %v534_v5 }
  0x60   : > { %885 = vmatpush.msra.mxu3 %v533_v10 }
  0x61   : > { %331 = vmatmul.f32.gmra.mxu0 %v277_v21  ;;  %364 = vmatmul.f32.gmra.mxu3 %v288_v24 }
  0x62   : > { %886 = vmatpush.msra.mxu3 %v532_v12 }
  0x64   : > { %887 = vmatpush.msra.mxu3 %v531_v13 }
  0x66   : > { %888 = vmatpush.msra.mxu3 %v530_v14 }
  0x68   : > { %889 = vmatpush.msra.mxu3 %v529_v15 }
  0x69   : > { %334 = vmatmul.f32.gmra.mxu0 %v278_v23  ;;  %367 = vmatmul.f32.gmra.mxu3 %v289_v26 }
  0x71   : > { %337 = vmatmul.f32.gmra.mxu0 %v279_v25 }
  0x79   : > { %340 = vmatmul.f32.gmra.mxu0 %v280_v27 }
  0x81   : > { %343 = vmatmul.f32.gmra.mxu0 %v281_v32 }
  0x89   : > { %346 = vmatmul.f32.gmra.mxu0 %v282_v33 }
  0x91   : > { %349 = vmatmul.f32.gmra.mxu0 %v283_v34 }
  0x99   : > { %352 = vmatmul.f32.gmra.mxu0 %v284_v35 }
  0xc6   : > { %v323_v40 = vpop.f32.mrf.mxu0 }
  0xc7   : > { %942 = vtanh.f32 %v323_v40 }
  0xcc   : > { %v356_v45 = vpop.f32.mrf.mxu3 }
  0xcd   : > { %v943_v41 = vpop.eup %942 }
  0xce   : > { %v326_v42 = vpop.f32.mrf.mxu0  ;;  %819 = vmatmul.msk.f32.vlgmr.msra.gmra.mxu1 %vm399_vm0, %v943_v41 }
  0xcf   : > { %944 = vtanh.f32 %v326_v42 }
  0xd4   : > { %v359_v48 = vpop.f32.mrf.mxu3 }
  0xd5   : > { %v945_v43 = vpop.eup %944 }
  0xd6   : > { %v329_v44 = vpop.f32.mrf.mxu0  ;;  %820 = vmatmul.msk.f32.gmra.mxu1 %vm399_vm0, %v945_v43 }
  0xd7   : > { %946 = vtanh.f32 %v329_v44 }
  0xdc   : > { %v362_v51 = vpop.f32.mrf.mxu3 }
  0xdd   : > { %v947_v46 = vpop.eup %946 }
  0xde   : > { %v332_v47 = vpop.f32.mrf.mxu0  ;;  %821 = vmatmul.msk.f32.gmra.mxu1 %vm399_vm0, %v947_v46 }
  0xdf   : > { %948 = vtanh.f32 %v332_v47 }
  0xe4   : > { %v365_v55 = vpop.f32.mrf.mxu3 }
  0xe5   : > { %v949_v49 = vpop.eup %948 }
  0xe6   : > { %v335_v50 = vpop.f32.mrf.mxu0  ;;  %822 = vmatmul.msk.f32.gmra.mxu1 %vm399_vm0, %v949_v49 }
  0xe7   : > { %950 = vtanh.f32 %v335_v50 }
  0xe8   : > { %952 = vtanh.f32 %v362_v51 }
  0xec   : > { %v368_v59 = vpop.f32.mrf.mxu3 }
  0xed   : > { %v951_v52 = vpop.eup %950 }
  0xee   : > { %v953_v53 = vpop.eup %952  ;;  %v338_v54 = vpop.f32.mrf.mxu0  ;;  %823 = vmatmul.msk.f32.gmra.mxu1 %vm399_vm0, %v951_v52 }
  0xef   : > { %954 = vtanh.f32 %v338_v54  ;;  %832 = vmatmul.msk.f32.vlgmr.msrb.gmra.mxu3 %vm399_vm0, %v953_v53 }
  0xf0   : > { %956 = vtanh.f32 %v365_v55 }
  0xf5   : > { %v955_v56 = vpop.eup %954 }
  0xf6   : > { %v957_v57 = vpop.eup %956  ;;  %v341_v58 = vpop.f32.mrf.mxu0  ;;  %824 = vmatmul.msk.f32.gmra.mxu1 %vm399_vm0, %v955_v56 }
  0xf7   : > { %958 = vtanh.f32 %v341_v58  ;;  %833 = vmatmul.msk.f32.gmra.mxu3 %vm399_vm0, %v957_v57 }
  0xf8   : > { %960 = vtanh.f32 %v368_v59 }
  0xfd   : > { %v959_v60 = vpop.eup %958 }
  0xfe   : > { %v961_v61 = vpop.eup %960  ;;  %v344_v62 = vpop.f32.mrf.mxu0  ;;  %825 = vmatmul.msk.f32.gmra.mxu1 %vm399_vm0, %v959_v60 }
  0xff   : > { %962 = vtanh.f32 %v344_v62  ;;  %834 = vmatmul.msk.f32.gmra.mxu3 %vm399_vm0, %v961_v61 }
 0x105   : > { %v963_v63 = vpop.eup %962 }
 0x106   : > { %v347_v0 = vpop.f32.mrf.mxu0  ;;  %826 = vmatmul.msk.f32.gmra.mxu1 %vm399_vm0, %v963_v63 }
 0x107   : > { %964 = vtanh.f32 %v347_v0 }
 0x10d   : > { %v965_v1 = vpop.eup %964 }
 0x10e   : > { %v350_v2 = vpop.f32.mrf.mxu0  ;;  %827 = vmatmul.msk.f32.gmra.mxu1 %vm399_vm0, %v965_v1  ;;  %v1441_v1 = vld [vmem:[%s1553_s5] ss:$0 sm:$0xff] }
 0x10f   : > { %966 = vtanh.f32 %v350_v2 }
 0x115   : > { %v967_v6 = vpop.eup %966 }
 0x116   : > { %v353_v7 = vpop.f32.mrf.mxu0  ;;  %828 = vmatmul.msk.f32.gmra.mxu1 %vm399_vm0, %v967_v6  ;;  %v1444_v6 = vand.u32 127, %v654_v4 }
 0x117   : > { %968 = vtanh.f32 %v353_v7 }
 0x118   : > { %970 = vtanh.f32 %v356_v45  ;;  %vm656_vm1 = vcmp.ge.s32.totalorder %v1444_v6, 8 }
 0x119   : > { %972 = vtanh.f32 %v359_v48 }
 0x11d   : > { %v969_v8 = vpop.eup %968 }
 0x11e   : > { %829 = vmatmul.msk.f32.gmra.mxu1 %vm399_vm0, %v969_v8  ;;  %v971_v9 = vpop.eup %970 }
 0x11f   : > { %v973_v11 = vpop.eup %972 }
 0x126   : > { %830 = vmatmul.msk.f32.gmra.mxu1 %vm399_vm0, %v971_v9 }
 0x12e   : > { %831 = vmatmul.msk.f32.gmra.mxu1 %vm399_vm0, %v973_v11 }
 0x14b   : > { %v465_v17 = vpop.f32.mrf.mxu1 }
 0x14c   : > { %v466_v18 = vadd.f32 %v1404_v16, %v465_v17 }
 0x14e   : > { %974 = vtanh.f32 %v466_v18 }
 0x153   : > { %v468_v19 = vpop.f32.mrf.mxu1 }
 0x154   : > { %v975_v20 = vpop.eup %974  ;;  %v469_v21 = vadd.f32 %v1404_v16, %v468_v19 }
 0x155   : > { %835 = vmatmul.msk.f32.vlgmr.msra.gmra.mxu2 %vm399_vm0, %v975_v20 }
 0x156   : > { %976 = vtanh.f32 %v469_v21 }
 0x15b   : > { %v471_v22 = vpop.f32.mrf.mxu1 }
 0x15c   : > { %v977_v23 = vpop.eup %976  ;;  %v472_v24 = vadd.f32 %v1404_v16, %v471_v22 }
 0x15d   : > { %836 = vmatmul.msk.f32.gmra.mxu2 %vm399_vm0, %v977_v23 }
 0x15e   : > { %978 = vtanh.f32 %v472_v24 }
 0x163   : > { %v474_v25 = vpop.f32.mrf.mxu1 }
 0x164   : > { %v979_v26 = vpop.eup %978  ;;  %v475_v27 = vadd.f32 %v1404_v16, %v474_v25 }
 0x165   : > { %837 = vmatmul.msk.f32.gmra.mxu2 %vm399_vm0, %v979_v26 }
 0x166   : > { %980 = vtanh.f32 %v475_v27 }
 0x16b   : > { %v477_v28 = vpop.f32.mrf.mxu1 }
 0x16c   : > { %v981_v29 = vpop.eup %980  ;;  %v478_v30 = vadd.f32 %v1404_v16, %v477_v28 }
 0x16d   : > { %838 = vmatmul.msk.f32.gmra.mxu2 %vm399_vm0, %v981_v29 }
 0x16e   : > { %982 = vtanh.f32 %v478_v30 }
 0x172   : > { %v504_v31 = vpop.f32.mrf.mxu3 }
 0x173   : > { %v480_v32 = vpop.f32.mrf.mxu1  ;;  %v505_v33 = vadd.f32 %v1404_v16, %v504_v31 }
 0x174   : > { %v983_v34 = vpop.eup %982  ;;  %v481_v35 = vadd.f32 %v1404_v16, %v480_v32 }
 0x175   : > { %839 = vmatmul.msk.f32.gmra.mxu2 %vm399_vm0, %v983_v34  ;;  %984 = vtanh.f32 %v505_v33 }
 0x176   : > { %986 = vtanh.f32 %v481_v35 }
 0x17a   : > { %v507_v36 = vpop.f32.mrf.mxu3 }
 0x17b   : > { %v985_v37 = vpop.eup %984  ;;  %v483_v38 = vpop.f32.mrf.mxu1  ;;  %v508_v39 = vadd.f32 %v1404_v16, %v507_v36 }
 0x17c   : > { %v987_v40 = vpop.eup %986  ;;  %v484_v41 = vadd.f32 %v1404_v16, %v483_v38  ;;  %848 = vmatmul.msk.f32.vlgmr.msra.gmra.mxu3 %vm399_vm0, %v985_v37 }
 0x17d   : > { %840 = vmatmul.msk.f32.gmra.mxu2 %vm399_vm0, %v987_v40  ;;  %988 = vtanh.f32 %v508_v39 }
 0x17e   : > { %990 = vtanh.f32 %v484_v41 }
 0x182   : > { %v510_v42 = vpop.f32.mrf.mxu3 }
 0x183   : > { %v989_v43 = vpop.eup %988  ;;  %v486_v44 = vpop.f32.mrf.mxu1  ;;  %v511_v45 = vadd.f32 %v1404_v16, %v510_v42 }
 0x184   : > { %v991_v46 = vpop.eup %990  ;;  %v487_v47 = vadd.f32 %v1404_v16, %v486_v44  ;;  %849 = vmatmul.msk.f32.gmra.mxu3 %vm399_vm0, %v989_v43 }
 0x185   : > { %841 = vmatmul.msk.f32.gmra.mxu2 %vm399_vm0, %v991_v46  ;;  %992 = vtanh.f32 %v511_v45 }
 0x186   : > { %994 = vtanh.f32 %v487_v47 }
 0x18b   : > { %v993_v48 = vpop.eup %992  ;;  %v489_v49 = vpop.f32.mrf.mxu1 }
 0x18c   : > { %v995_v50 = vpop.eup %994  ;;  %v490_v51 = vadd.f32 %v1404_v16, %v489_v49  ;;  %850 = vmatmul.msk.f32.gmra.mxu3 %vm399_vm0, %v993_v48 }
 0x18d   : > { %842 = vmatmul.msk.f32.gmra.mxu2 %vm399_vm0, %v995_v50 }
 0x18e   : > { %996 = vtanh.f32 %v490_v51 }
 0x193   : > { %v492_v52 = vpop.f32.mrf.mxu1 }
 0x194   : > { %v997_v53 = vpop.eup %996  ;;  %v493_v54 = vadd.f32 %v1404_v16, %v492_v52 }
 0x195   : > { %843 = vmatmul.msk.f32.gmra.mxu2 %vm399_vm0, %v997_v53 }
 0x196   : > { %998 = vtanh.f32 %v493_v54 }
 0x19b   : > { %v495_v55 = vpop.f32.mrf.mxu1 }
 0x19c   : > { %v999_v56 = vpop.eup %998  ;;  %v496_v57 = vadd.f32 %v1404_v16, %v495_v55 }
 0x19d   : > { %844 = vmatmul.msk.f32.gmra.mxu2 %vm399_vm0, %v999_v56 }
 0x19e   : > { %1000 = vtanh.f32 %v496_v57 }
 0x1a3   : > { %v498_v58 = vpop.f32.mrf.mxu1 }
 0x1a4   : > { %v1001_v59 = vpop.eup %1000  ;;  %v499_v60 = vadd.f32 %v1404_v16, %v498_v58 }
 0x1a5   : > { %845 = vmatmul.msk.f32.gmra.mxu2 %vm399_vm0, %v1001_v59 }
 0x1a6   : > { %1002 = vtanh.f32 %v499_v60 }
 0x1ab   : > { %v501_v61 = vpop.f32.mrf.mxu1 }
 0x1ac   : > { %v1003_v62 = vpop.eup %1002  ;;  %v502_v63 = vadd.f32 %v1404_v16, %v501_v61 }
 0x1ad   : > { %846 = vmatmul.msk.f32.gmra.mxu2 %vm399_vm0, %v1003_v62 }
 0x1ae   : > { %1004 = vtanh.f32 %v502_v63 }
 0x1b4   : > { %v1005_v0 = vpop.eup %1004 }
 0x1b5   : > { %847 = vmatmul.msk.f32.gmra.mxu2 %vm399_vm0, %v1005_v0 }
 0x1d8   : > { %v606_v2 = vpop.f32.mrf.mxu2 }
 0x1d9   : > { %v607_v3 = vadd.f32 %v1441_v1, %v606_v2 }
 0x1db   : > { %v657_v5 = vmul.f32 1.442695, %v607_v3 }
 0x1dd   : > { %1006 = vpow2.f32 %v657_v5 }
 0x1e0   : > { %v609_v7 = vpop.f32.mrf.mxu2 }
 0x1e1   : > { %v610_v8 = vadd.f32 %v1441_v1, %v609_v7 }
 0x1e3   : > { %v1007_v9 = vpop.eup %1006  ;;  %v659_v10 = vmul.f32 1.442695, %v610_v8 }
 0x1e4   : > { %v689_v11 = vsel %vm656_vm1, %v1007_v9, %v607_v3 }
 0x1e5   : > { %705 = vst [vmem:[%s1452_s14] sm:$0xff] %v689_v11  ;;  %1008 = vpow2.f32 %v659_v10 }
 0x1e8   : > { %v612_v12 = vpop.f32.mrf.mxu2 }
 0x1e9   : > { %v613_v13 = vadd.f32 %v1441_v1, %v612_v12 }
 0x1eb   : > { %v1009_v14 = vpop.eup %1008  ;;  %v661_v15 = vmul.f32 1.442695, %v613_v13 }
 0x1ec   : > { %v690_v16 = vsel %vm656_vm1, %v1009_v14, %v610_v8 }
 0x1ed   : > { %706 = vst [vmem:[%s1452_s14 + $0x8] sm:$0xff] %v690_v16  ;;  %1010 = vpow2.f32 %v661_v15 }
 0x1f0   : > { %v615_v17 = vpop.f32.mrf.mxu2 }
 0x1f1   : > { %v616_v18 = vadd.f32 %v1441_v1, %v615_v17 }
 0x1f3   : > { %v1011_v19 = vpop.eup %1010  ;;  %v663_v20 = vmul.f32 1.442695, %v616_v18 }
 0x1f4   : > { %v691_v21 = vsel %vm656_vm1, %v1011_v19, %v613_v13 }
 0x1f5   : > { %707 = vst [vmem:[%s1452_s14 + $0x10] sm:$0xff] %v691_v21  ;;  %1012 = vpow2.f32 %v663_v20 }
 0x1f8   : > { %v618_v22 = vpop.f32.mrf.mxu2 }
 0x1f9   : > { %v619_v23 = vadd.f32 %v1441_v1, %v618_v22 }
 0x1fb   : > { %v1013_v24 = vpop.eup %1012  ;;  %v665_v25 = vmul.f32 1.442695, %v619_v23 }
 0x1fc   : > { %v692_v26 = vsel %vm656_vm1, %v1013_v24, %v616_v18 }
 0x1fd   : > { %708 = vst [vmem:[%s1452_s14 + $0x18] sm:$0xff] %v692_v26  ;;  %1014 = vpow2.f32 %v665_v25 }
 0x1ff   : > { %v645_v27 = vpop.f32.mrf.mxu3 }
 0x200   : > { %v621_v28 = vpop.f32.mrf.mxu2  ;;  %v646_v29 = vadd.f32 %v1441_v1, %v645_v27 }
 0x201   : > { %v622_v30 = vadd.f32 %v1441_v1, %v621_v28 }
 0x202   : > { %v683_v31 = vmul.f32 1.442695, %v646_v29 }
 0x203   : > { %v1015_v32 = vpop.eup %1014  ;;  %v667_v33 = vmul.f32 1.442695, %v622_v30 }
 0x204   : > { %v693_v34 = vsel %vm656_vm1, %v1015_v32, %v619_v23  ;;  %1016 = vpow2.f32 %v683_v31 }
 0x205   : > { %709 = vst [vmem:[%s1452_s14 + $0x20] sm:$0xff] %v693_v34  ;;  %1018 = vpow2.f32 %v667_v33 }
 0x207   : > { %v648_v35 = vpop.f32.mrf.mxu3 }
 0x208   : > { %v624_v36 = vpop.f32.mrf.mxu2  ;;  %v649_v37 = vadd.f32 %v1441_v1, %v648_v35 }
 0x209   : > { %v625_v38 = vadd.f32 %v1441_v1, %v624_v36 }
 0x20a   : > { %v1017_v39 = vpop.eup %1016  ;;  %v685_v40 = vmul.f32 1.442695, %v649_v37 }
 0x20b   : > { %v1019_v41 = vpop.eup %1018  ;;  %v669_v42 = vmul.f32 1.442695, %v625_v38  ;;  %v702_v43 = vsel %vm656_vm1, %v1017_v39, %v646_v29 }
 0x20c   : > { %v694_v44 = vsel %vm656_vm1, %v1019_v41, %v622_v30  ;;  %718 = vst [vmem:[%s1452_s14 + $0x68] sm:$0xff] %v702_v43  ;;  %1020 = vpow2.f32 %v685_v40 }
 0x20d   : > { %710 = vst [vmem:[%s1452_s14 + $0x28] sm:$0xff] %v694_v44  ;;  %1022 = vpow2.f32 %v669_v42 }
 0x20f   : > { %v651_v45 = vpop.f32.mrf.mxu3 }
 0x210   : > { %v627_v46 = vpop.f32.mrf.mxu2  ;;  %v652_v47 = vadd.f32 %v1441_v1, %v651_v45 }
 0x211   : > { %v628_v48 = vadd.f32 %v1441_v1, %v627_v46 }
 0x212   : > { %v1021_v49 = vpop.eup %1020  ;;  %v687_v50 = vmul.f32 1.442695, %v652_v47 }
 0x213   : > { %v1023_v51 = vpop.eup %1022  ;;  %v671_v52 = vmul.f32 1.442695, %v628_v48  ;;  %v703_v53 = vsel %vm656_vm1, %v1021_v49, %v649_v37 }
 0x214   : > { %v695_v54 = vsel %vm656_vm1, %v1023_v51, %v625_v38  ;;  %719 = vst [vmem:[%s1452_s14 + $0x70] sm:$0xff] %v703_v53  ;;  %1024 = vpow2.f32 %v687_v50 }
 0x215   : > { %711 = vst [vmem:[%s1452_s14 + $0x30] sm:$0xff] %v695_v54  ;;  %1026 = vpow2.f32 %v671_v52 }
 0x218   : > { %v630_v55 = vpop.f32.mrf.mxu2 }
 0x219   : > { %v631_v56 = vadd.f32 %v1441_v1, %v630_v55 }
 0x21a   : > { %v1025_v57 = vpop.eup %1024 }
 0x21b   : > { %v1027_v58 = vpop.eup %1026  ;;  %v673_v59 = vmul.f32 1.442695, %v631_v56  ;;  %v704_v60 = vsel %vm656_vm1, %v1025_v57, %v652_v47 }
 0x21c   : > { %v696_v61 = vsel %vm656_vm1, %v1027_v58, %v628_v48  ;;  %720 = vst [vmem:[%s1452_s14 + $0x78] sm:$0xff] %v704_v60 }
 0x21d   : > { %712 = vst [vmem:[%s1452_s14 + $0x38] sm:$0xff] %v696_v61  ;;  %1028 = vpow2.f32 %v673_v59 }
 0x220   : > { %v633_v62 = vpop.f32.mrf.mxu2 }
 0x221   : > { %v634_v63 = vadd.f32 %v1441_v1, %v633_v62 }
 0x223   : > { %v1029_v0 = vpop.eup %1028  ;;  %v675_v2 = vmul.f32 1.442695, %v634_v63 }
 0x224   : > { %v697_v3 = vsel %vm656_vm1, %v1029_v0, %v631_v56 }
 0x225   : > { %713 = vst [vmem:[%s1452_s14 + $0x40] sm:$0xff] %v697_v3  ;;  %1030 = vpow2.f32 %v675_v2 }
 0x228   : > { %v636_v4 = vpop.f32.mrf.mxu2 }
 0x229   : > { %v637_v5 = vadd.f32 %v1441_v1, %v636_v4 }
 0x22b   : > { %v1031_v7 = vpop.eup %1030  ;;  %v677_v8 = vmul.f32 1.442695, %v637_v5 }
 0x22c   : > { %v698_v9 = vsel %vm656_vm1, %v1031_v7, %v634_v63 }
 0x22d   : > { %714 = vst [vmem:[%s1452_s14 + $0x48] sm:$0xff] %v698_v9  ;;  %1032 = vpow2.f32 %v677_v8 }
 0x230   : > { %v639_v10 = vpop.f32.mrf.mxu2 }
 0x231   : > { %v640_v11 = vadd.f32 %v1441_v1, %v639_v10 }
 0x233   : > { %v1033_v12 = vpop.eup %1032  ;;  %v679_v13 = vmul.f32 1.442695, %v640_v11 }
 0x234   : > { %v699_v14 = vsel %vm656_vm1, %v1033_v12, %v637_v5 }
 0x235   : > { %715 = vst [vmem:[%s1452_s14 + $0x50] sm:$0xff] %v699_v14  ;;  %1034 = vpow2.f32 %v679_v13 }
 0x238   : > { %v642_v15 = vpop.f32.mrf.mxu2 }
 0x239   : > { %v643_v16 = vadd.f32 %v1441_v1, %v642_v15 }
 0x23b   : > { %v1035_v17 = vpop.eup %1034  ;;  %v681_v18 = vmul.f32 1.442695, %v643_v16 }
 0x23c   : > { %v700_v19 = vsel %vm656_vm1, %v1035_v17, %v640_v11 }
 0x23d   : > { %716 = vst [vmem:[%s1452_s14 + $0x58] sm:$0xff] %v700_v19  ;;  %1036 = vpow2.f32 %v681_v18 }
 0x243   : > { %v1037_v20 = vpop.eup %1036 }
 0x244   : > { %v701_v1 = vsel %vm656_vm1, %v1037_v20, %v643_v16 }
 0x245   : > { %717 = vst [vmem:[%s1452_s14 + $0x60] sm:$0xff] %v701_v1 }
 0x246   : > { %1095 = shalt.err (!%p1092_p4)
}
 0x247   : > { %s1138_s18 = smov 128   ;;  %s1139_s14 = smov 8  }
 0x248   : > { %892 = dma.vmem_to_hbm [thread:$0]  (%p1225_p11), %s735_s16, 2048, %s737_s29, %s722_s25, %s1138_s18, %s1138_s18, %s1139_s14  }
 0x249 PF: > { %s751_s28 = sand.u32 1, %s1122_s21   ;;  %p1560_p7 = scmp.ge.s32.totalorder %s1134_s24, 2 }
 0x24a   : > { %s752_s15 = scalar_lea.sflag [#allocation4], %s751_s28 }
 0x24b   : > { %p899_p5 = pnand %p1560_p7, %p1229_p12 }
 0x24d   : > { %p900_p8 = pneg %p899_p5 }
 0x24f   : > { %1117 = dma.done.wait (%p900_p8), %s752_s15, 2048  }
 0x250   : > { %1119 = vsyncadd (%p900_p8), %s752_s15, 4294965248  ;;  %p19_p10 = scmp.ge.s32.totalorder %s1200_s27, 4   ;;  %s1561_s21 = smov %s1126_s22 }
 0x251   : > { %s1562_s22 = smov %s1130_s23  ;;  %s1563_s23 = smov %s1212_s30 }
 0x252   : > { %s1564_s24 = smov %s1200_s27  ;;  %21 = sbr.rel (!%p19_p10) target bundleno = 5 (0x5), region = 89 }
 0x257   :  { %758 = vsyncpa [#allocation3], 1 }
 0x258   :  { %760 = vsyncpa [#allocation3 + $0x1], 1 }
 0x259   :  { %761 = vsyncpa [#allocation4], 1 }
 0x25a   :  { %763 = vsyncpa [#allocation4 + $0x1], 1 }

</bundles_post_ra>
